<compile_context>
chip_gen: v5e
topology: v5e:2x2
jax: 0.10.0
libtpu: 0.0.40
codegen_flags: <defaults>
</compile_context>

<pallas_src>
import functools

import jax
import jax.numpy as jnp
from jax.experimental import pallas as pl
from jax.experimental.pallas import tpu as pltpu

_LANE = 128          # lane width of a vreg
_SUBLANE = 8         # sublane count of a vreg
_MiB = 1024 * 1024


# ----------------------------------------------------------------------------
# Hardware-aware budgets
# ----------------------------------------------------------------------------
@functools.lru_cache(maxsize=1)
def _hw_config():
    """Returns (per_buffer_tile_bytes, vmem_limit_bytes, multi_core_tc)."""
    kind = ""
    try:
        kind = jax.devices()[0].device_kind.lower()
    except Exception:
        pass
    vmem_phys = None
    try:
        vmem_phys = int(pltpu.get_tpu_info().vmem_capacity_bytes)
    except Exception:
        pass

    is_v7 = ("v7" in kind) or (vmem_phys is not None and vmem_phys <= 64 * _MiB)
    if is_v7:
        # 64 MiB physical VMEM, 3.2 TB/s HBM, 2 TensorCores per chip.
        # ~40 MiB resident footprint (2 bufs x (x+out+pe)) under a 48 MiB limit.
        return 10 * _MiB, 48 * _MiB, True
    if "v6" in kind:
        # 128 MiB physical VMEM, 1.4 TB/s HBM: 8 MiB tiles halve per-step overhead.
        return 8 * _MiB, 64 * _MiB, False
    # v5e / unknown: keep the explicit 32 MiB limit (v5e scoped default is 16 MiB).
    return 4 * _MiB, 32 * _MiB, False


# ----------------------------------------------------------------------------
# Kernel (shared by both layouts: plain broadcast add on the VPU)
# ----------------------------------------------------------------------------
def _add_pe_kernel(x_ref, pe_ref, o_ref):
    o_ref[...] = x_ref[...] + pe_ref[...]


# ----------------------------------------------------------------------------
# Layout helpers
# ----------------------------------------------------------------------------
def _largest_div_tile(n, max_rows):
    """Largest multiple-of-8 divisor of n that is <= max_rows (n % 8 == 0)."""
    start = min(n, max(max_rows, _SUBLANE))
    start -= start % _SUBLANE
    start = max(start, _SUBLANE)
    for cand in range(start, _SUBLANE - 1, -_SUBLANE):
        if n % cand == 0:
            return cand
    return _SUBLANE


# ----------------------------------------------------------------------------
# Path 1: lane-collapsed (B, S*D) — general path, always lane-dense
# ----------------------------------------------------------------------------
def _lane_dense_call(x, pe_slice, tile_bytes, vmem_limit, multi_core, donate):
    B, S, D = x.shape
    F = S * D
    itemsize = jnp.dtype(x.dtype).itemsize

    x2 = x.reshape(B, F)             # layout glue only
    pe2 = pe_slice.reshape(1, F)

    # Sublane tile over batch: full extent when B <= 8, otherwise a multiple
    # of 8 (ragged tail batch block is masked by Pallas, never tb = B).
    if B <= _SUBLANE:
        tb = B
    else:
        tb = min(B, 512)
        tb -= tb % _SUBLANE

    # Lane tile solved from the total resident footprint:
    #   2 bufs * (x tile + out tile + pe tile) = 2 * tl * itemsize * (2*tb + 1)
    # target = 4 * tile_bytes  (well under vmem_limit on every generation).
    if F < _LANE:
        tl = F                       # tiny flat row: single full-extent block
    else:
        per_col_bytes = 2 * itemsize * (2 * tb + 1)
        budget_tl = max(_LANE, ((4 * tile_bytes) // per_col_bytes) // _LANE * _LANE)
        tl = min(budget_tl, (F // _LANE) * _LANE)   # tail of F is a masked block

    grid_f = pl.cdiv(F, tl)
    grid_b = pl.cdiv(B, tb)

    # v7x: make sure both TensorCores get at least one block.
    if multi_core and grid_f * grid_b < 2 and tl >= 2 * _LANE:
        tl = max(_LANE, (tl // 2) // _LANE * _LANE)
        grid_f = pl.cdiv(F, tl)

    cost = pl.CostEstimate(flops=B * F, transcendentals=0,
                           bytes_accessed=(2 * B * F + F) * itemsize)

    out2 = pl.pallas_call(
        _add_pe_kernel,
        out_shape=jax.ShapeDtypeStruct((B, F), x.dtype),
        # Batch innermost: pe block index constant across it -> pe buffer reused.
        grid=(grid_f, grid_b),
        in_specs=[
            pl.BlockSpec((tb, tl), lambda f, b: (b, f)),   # x tile
            pl.BlockSpec((1, tl), lambda f, b: (0, f)),    # pe lane tile
        ],
        out_specs=pl.BlockSpec((tb, tl), lambda f, b: (b, f)),
        compiler_params=pltpu.CompilerParams(
            dimension_semantics=("parallel", "parallel"),
            vmem_limit_bytes=vmem_limit,
        ),
        cost_estimate=cost,
        input_output_aliases={0: 0} if donate else {},
    )(x2, pe2)
    return out2.reshape(B, S, D)


# ----------------------------------------------------------------------------
# Path 2: (B*S, D) fold for small batch — sublane AND lane dense
# ----------------------------------------------------------------------------
def _batch_fold_call(x, pe_slice, tile_bytes, vmem_limit, multi_core, donate):
    B, S, D = x.shape
    itemsize = jnp.dtype(x.dtype).itemsize

    x2 = x.reshape(B * S, D)

    # 6 resident tiles (2 bufs each of x / out / pe) -> per-tile budget.
    per_tile = max(_SUBLANE * _LANE * itemsize, (4 * tile_bytes) // 6)

    # Lane tile over D (D % 128 == 0 on this path).
    if D * _SUBLANE * itemsize <= per_tile:
        td = D
    else:
        td = min(D, max(_LANE, (per_tile // (_SUBLANE * itemsize)) // _LANE * _LANE))

    # Sublane tile over S: must divide S so x blocks never straddle a batch
    # element and the pe modulo index_map stays rectangular.
    max_rows = max(_SUBLANE, (per_tile // (td * itemsize)) // _SUBLANE * _SUBLANE)
    ts = _largest_div_tile(S, max_rows)

    # v7x: keep >= 2 blocks on the parallel axes so both TensorCores work.
    if multi_core and (S // ts) * pl.cdiv(D, td) < 2:
        if S >= 2 * _SUBLANE:
            ts = _largest_div_tile(S, S // 2)
        elif D >= 2 * _LANE:
            td = max(_LANE, (td // 2) // _LANE * _LANE)

    n_sb = S // ts
    grid = (n_sb, pl.cdiv(D, td), B)

    cost = pl.CostEstimate(flops=B * S * D, transcendentals=0,
                           bytes_accessed=(2 * B * S * D + S * D) * itemsize)

    out2 = pl.pallas_call(
        _add_pe_kernel,
        out_shape=jax.ShapeDtypeStruct((B * S, D), x.dtype),
        # Batch innermost ("arbitrary") so the pe tile stays resident across it.
        grid=grid,
        in_specs=[
            pl.BlockSpec((ts, td), lambda s, j, b, n=n_sb: (b * n + s, j)),  # x
            pl.BlockSpec((ts, td), lambda s, j, b: (s, j)),                  # pe
        ],
        out_specs=pl.BlockSpec((ts, td), lambda s, j, b, n=n_sb: (b * n + s, j)),
        compiler_params=pltpu.CompilerParams(
            dimension_semantics=("parallel", "parallel", "arbitrary"),
            vmem_limit_bytes=vmem_limit,
        ),
        cost_estimate=cost,
        input_output_aliases={0: 0} if donate else {},
    )(x2, pe_slice)
    return out2.reshape(B, S, D)


# ----------------------------------------------------------------------------
# Public wrapper
# ----------------------------------------------------------------------------
def learnable_positional_encoding(x, pe_table, donate_x=False):
    """Forward of LearnablePositionalEncoding.

    x: (B, S, D); pe_table: (max_len, D) learnable embedding table.
    Returns x + pe_table[:S] broadcast over the batch axis.
    The position_ids == arange(S) lookup reduces to the row slice pe_table[:S].
    """
    B, S, D = x.shape
    pe_slice = pe_table[:S, :].astype(x.dtype)   # glue: rows 0..S-1
    tile_bytes, vmem_limit, multi_core = _hw_config()

    # Sublane-dense fold when batch is too small to fill a vreg's sublanes
    # (v7x vld/vst path) and the shape allows a rectangular pe index_map.
    if B < _SUBLANE and D % _LANE == 0 and S % _SUBLANE == 0:
        return _batch_fold_call(x, pe_slice, tile_bytes, vmem_limit,
                                multi_core, donate_x)
    # General path: lane-collapsed, masked tail blocks handle any shape.
    return _lane_dense_call(x, pe_slice, tile_bytes, vmem_limit,
                            multi_core, donate_x)


# ----------------------------------------------------------------------------
# Demo / self-check
# ----------------------------------------------------------------------------
if __name__ == "__main__":
    key = jax.random.PRNGKey(0)
    keys = jax.random.split(key, 8)

    def ref_fn(x, pe_table):
        S = x.shape[1]
        return x + pe_table[:S].astype(x.dtype)[None, :, :]

    # (batch, seq, d_model, max_len) — small shapes consistent with the module.
    cases = [
        (2, 8, 32, 16),    # module demo shape -> lane-dense path (F = 256)
        (2, 16, 128, 32),  # small batch, lane-aligned D -> batch-fold path
        (2, 8, 20, 16),    # F = 160 (not multiple of 128) -> masked tail lane block
        (3, 5, 12, 16),    # tiny F < 128 -> single full-extent block
        (10, 8, 32, 16),   # ragged batch > 8 -> tb = 8 with masked tail batch block
    ]

    for i, (b, s, d, ml) in enumerate(cases):
        kx, kp = jax.random.split(keys[i], 2)
        x = jax.random.normal(kx, (b, s, d), dtype=jnp.float32)
        pe = jax.random.normal(kp, (ml, d), dtype=jnp.float32)
        out = jax.block_until_ready(learnable_positional_encoding(x, pe))
        ref = ref_fn(x, pe)
        assert out.shape == x.shape
        assert jnp.allclose(out, ref, atol=1e-6, rtol=1e-6), \
            f"mismatch vs reference for case {i}: shape {(b, s, d)}"

    print("KERNEL_OK")
</pallas_src>

<mosaic_0001>
module attributes {stable_mosaic.version = 11 : i64} {
  func.func @_add_pe_kernel(%arg0: i32, %arg1: i32, %arg2: memref<2x256xf32, #tpu.memory_space<vmem>>, %arg3: memref<1x256xf32, #tpu.memory_space<vmem>>, %arg4: memref<2x256xf32, #tpu.memory_space<vmem>>) attributes {dimension_semantics = [#tpu.dimension_semantics<parallel>, #tpu.dimension_semantics<parallel>], iteration_bounds = array<i64: 1, 1>, scalar_prefetch = 0 : i64, scratch_operands = 0 : i64, tpu.core_type = #tpu.core_type<tc>, window_params = [{transform_indices = @transform_0, window_bounds = array<i64: 2, 256>}, {transform_indices = @transform_1, window_bounds = array<i64: 1, 256>}, {transform_indices = @transform_2, window_bounds = array<i64: 2, 256>}]} {
    %c0 = arith.constant 0 : index
    %c0_0 = arith.constant 0 : index
    %0 = vector.load %arg2[%c0, %c0_0] : memref<2x256xf32, #tpu.memory_space<vmem>>, vector<2x256xf32>
    %c0_1 = arith.constant 0 : index
    %c0_2 = arith.constant 0 : index
    %1 = vector.load %arg3[%c0_1, %c0_2] : memref<1x256xf32, #tpu.memory_space<vmem>>, vector<1x256xf32>
    %2 = vector.broadcast %1 : vector<1x256xf32> to vector<2x256xf32>
    %3 = arith.addf %0, %2 : vector<2x256xf32>
    %c0_3 = arith.constant 0 : index
    %c0_4 = arith.constant 0 : index
    %4 = vector.load %arg4[%c0_3, %c0_4] : memref<2x256xf32, #tpu.memory_space<vmem>>, vector<2x256xf32>
    tpu.vector_store %arg4[%c0_3, %c0_4], %3 {strides = array<i32>} : memref<2x256xf32, #tpu.memory_space<vmem>>, vector<2x256xf32>,
    return
  }
  func.func @transform_0(%arg0: i32, %arg1: i32) -> (i32, i32) {
    %c0_i32 = arith.constant 0 : i32
    return %arg1, %arg0 : i32, i32
  }
  func.func @transform_1(%arg0: i32, %arg1: i32) -> (i32, i32) {
    %c0_i32 = arith.constant 0 : i32
    %c0_i32_0 = arith.constant 0 : i32
    return %c0_i32, %arg0 : i32, i32
  }
  func.func @transform_2(%arg0: i32, %arg1: i32) -> (i32, i32) {
    %c0_i32 = arith.constant 0 : i32
    return %arg1, %arg0 : i32, i32
  }
}

</mosaic_0001>

<bundles_post_ra>
// kernel: tpu_custom_call.1
= control target key start
LH: loop header
LB: loop body
LE: loop exit
PB: predicated region body
PF: predicated region fallthrough
CT: control target
= control target key end

     0   :  { %7 = vsyncpa [#allocation3], 0  ;;  %s177_s0 = inlined_call_operand.hbm [shape: f32[2,256], index: 0, kind: input, shape index: {}]   ;;  %s178_s1 = inlined_call_operand.hbm [shape: f32[1,256], index: 1, kind: input, shape index: {}]   ;;  %s179_s2 = inlined_call_operand.hbm [shape: f32[2,256], index: 2, kind: output, shape index: {}]  }
   0x1   :  { %8 = vsyncpa [#allocation6], 0 }
   0x2   :  { %9 = vsyncpa [#allocation4], 0  ;;  %s15_s11 = sshll.u32 %s177_s0, 4  ;;  %s150_s12 = smov [#allocation2]   ;;  %s16_s11 = int_to_ptr.hbm [resolvable:$true] %s15_s11 }
   0x3   :  { %s17_s13 = sshll.u32 %s150_s12, 4  ;;  %s26_s16 = sshll.u32 %s178_s1, 4  ;;  %s18_s13 = int_to_ptr.vmem [resolvable:$true] %s17_s13  ;;  %s27_s16 = int_to_ptr.hbm [resolvable:$true] %s26_s16 }
   0x4   :  { %20 = dma.hbm_to_vmem [thread:$0]  %s16_s11, 64, %s18_s13, [#allocation3]  }
   0x5   :  { %s151_s17 = smov [#allocation5]  }
   0x6   :  { %s28_s18 = sshll.u32 %s151_s17, 4  ;;  %s29_s18 = int_to_ptr.vmem [resolvable:$true] %s28_s18 }
   0x7   :  { %31 = dma.hbm_to_vmem [thread:$0]  %s27_s16, 32, %s29_s18, [#allocation6]  }
   0x8   :  { %144 = dma.done.wait [#allocation3], 64  }
   0x9   :  { %145 = vsyncadd [#allocation3], 4294967232 }
   0xa   :  { %146 = dma.done.wait [#allocation6], 32  }
   0xb   :  { %147 = vsyncadd [#allocation6], 4294967264  ;;  %v41_v0 = vld [vmem:[#allocation5] sm:$0x3]  ;;  %vm46_vm0 = vcmask 1041408   ;;  %s152_s0 = smov [#allocation7]  }
   0xc   :  { %v43_v1 = vperm.slane %v41_v0, 0  ;;  %v44_v2 = vperm.slane %v41_v0, 1  ;;  %v40_v3 = vld [vmem:[#allocation2] sm:$0xf]  ;;  %s56_s19 = sshll.u32 %s152_s0, 4  ;;  %s58_s21 = sshll.u32 %s179_s2, 4  ;;  %s57_s19 = int_to_ptr.vmem [resolvable:$true] %s56_s19  ;;  %s59_s21 = int_to_ptr.hbm [resolvable:$true] %s58_s21 }
   0xe   :  { %v45_v4 = vrot.slane %v44_v2, 6 }
  0x10   :  { %v47_v5 = vsel %vm46_vm0, %v43_v1, %v45_v4 }
  0x11   :  { %v49_v6 = vadd.f32 %v47_v5, %v40_v3 }
  0x13   :  { %50 = vst [vmem:[#allocation7] sm:$0xf] %v49_v6 }
  0x14   :  { %61 = dma.vmem_to_hbm [thread:$0]  %s57_s19, 64, %s59_s21, [#allocation4]  }
  0x15   :  { %148 = dma.done.wait [#allocation4], 64  }
  0x16   :  { %149 = vsyncadd [#allocation4], 4294967232 }
  0x17   :  { %66 = vsyncpa [#allocation3], 1 }
  0x18   :  { %67 = vsyncpa [#allocation6], 1 }
  0x19   :  { %68 = vsyncpa [#allocation4], 1 }

</bundles_post_ra>
